<compile_context>
chip_gen: v6e
topology: v6e:2x2x1
jax: 0.10.0
libtpu: 0.0.40
codegen_flags: <defaults>
</compile_context>

<pallas_src>
import jax
import jax.numpy as jnp
from jax.experimental import pallas as pl
from jax.experimental.pallas import tpu as pltpu


def _round_up(n, m):
    return ((n + m - 1) // m) * m


# Leave headroom under the 32 MiB default scoped-VMEM limit (v7x: 64 MiB phys).
_VMEM_BUDGET = 24 * 1024 * 1024


def _process_kernel(x_ref, w_ref, b_ref, o_ref):
    # x_ref: (tb, d_in)  w_ref: (d_in, tn)  b_ref: (1, tn)  o_ref: (tb, tn)
    # One MXU matmul; bias add rides the VALU slot (slack next to MXU/store);
    # single lane-dense store (unmasked on full tiles, masked only on tails).
    o_ref[...] = (
        jnp.dot(x_ref[...], w_ref[...], preferred_element_type=jnp.float32)
        + b_ref[...]
    ).astype(o_ref.dtype)


def prepare_llmodel_params(w, b, *, intercept=True):
    """One-time weight/bias augmentation, hoisted out of the per-call path.

    Folds the intercept column into the matmul (zero weight column + 1.0 bias
    entry) and pads the output width to a lane-dense multiple: 128 when
    p_out <= 128, else a multiple of 256 (full 256-wide MXU tiles on v6e/v7x).
    Call once and reuse the returned (w_aug, b_aug); under jit with constant
    weights XLA constant-folds this anyway.

    w: (d_in, p) float32 (backbone weight, stored transposed vs torch Linear)
    b: (p,)      float32 (backbone bias)
    returns (w_aug (d_in, n_pad), b_aug (1, n_pad), p_out)
    """
    d_in, p = w.shape
    p_out = p + 1 if intercept else p
    if intercept:
        w = jnp.concatenate([jnp.zeros((d_in, 1), w.dtype), w], axis=1)
        b = jnp.concatenate([jnp.ones((1,), b.dtype), b], axis=0)
    n_pad = 128 if p_out <= 128 else _round_up(p_out, 256)
    if n_pad != p_out:
        w = jnp.pad(w, ((0, 0), (0, n_pad - p_out)))
        b = jnp.pad(b, ((0, n_pad - p_out),))
    return w, b.reshape(1, n_pad), p_out


def _choose_tiles(B, d_in, n_pad, itemsize=4):
    # Batch tile: big tiles amortize the ~0.35us/grid-step overhead; for large
    # B force >= 2 grid steps so both v7x TensorCores get sharded work.
    if B <= 256:
        tile_b = B  # single step; block == full batch dim (always a legal block)
    else:
        tile_b = min(1024, _round_up(pl.cdiv(B, 2), 8))
    # N tile: single weight slab unless it would blow the scoped-VMEM budget
    # (double-buffered weight + x + output blocks); then drop to 512-wide
    # lane-dense N blocks (partial tail blocks handled by Pallas).
    tile_n = n_pad
    vmem_bytes = 2 * itemsize * (d_in * n_pad + tile_b * d_in + tile_b * n_pad)
    if vmem_bytes > _VMEM_BUDGET and n_pad > 512:
        tile_n = 512
    return tile_b, tile_n


def llmodel_process(x, w_aug, b_aug, *, out_dtype=jnp.float32,
                    tile_b=None, tile_n=None):
    """Pallas implementation of LLModel.process with a Linear backbone.

    x:     (B, d_in) float32
    w_aug: (d_in, n_pad), b_aug: (1, n_pad)  -- from prepare_llmodel_params().
    Returns the lane-padded (B, n_pad) result; the valid columns are
    [:, :p_out].  The output is intentionally NOT sliced here so consumers can
    slice lazily / keep the slice fused in their own jit (avoids an extra HBM
    pass over the freshly written output).
    """
    B, d_in = x.shape
    n_pad = w_aug.shape[1]
    tb, tn = _choose_tiles(B, d_in, n_pad)
    if tile_b is not None:
        tb = tile_b
    if tile_n is not None:
        tn = tile_n

    grid = (pl.cdiv(B, tb), pl.cdiv(n_pad, tn))
    return pl.pallas_call(
        _process_kernel,
        out_shape=jax.ShapeDtypeStruct((B, n_pad), out_dtype),
        grid=grid,
        in_specs=[
            pl.BlockSpec((tb, d_in), lambda i, j: (i, 0)),
            pl.BlockSpec((d_in, tn), lambda i, j: (0, j)),
            pl.BlockSpec((1, tn), lambda i, j: (0, j)),
        ],
        out_specs=pl.BlockSpec((tb, tn), lambda i, j: (i, j)),
        compiler_params=pltpu.CompilerParams(
            dimension_semantics=("parallel", "parallel"),
        ),
    )(x, w_aug, b_aug)


if __name__ == "__main__":
    key = jax.random.PRNGKey(0)
    k_x, k_w, k_b = jax.random.split(key, 3)

    B, d_in, p = 16, 24, 32   # backbone: Linear(d_in -> p); LLModel p_adjusted = p + 1

    x = jax.random.normal(k_x, (B, d_in), dtype=jnp.float32)
    w = jax.random.normal(k_w, (d_in, p), dtype=jnp.float32) * 0.1
    b = jax.random.normal(k_b, (p,), dtype=jnp.float32) * 0.1

    # --- intercept=True path (process = ones-column cat(backbone(X))) ---
    w_aug, b_aug, p_out = prepare_llmodel_params(w, b, intercept=True)  # one-time
    out_padded = jax.block_until_ready(llmodel_process(x, w_aug, b_aug))
    out = out_padded[:, :p_out]   # consumer-side lazy slice of the padded lanes

    ref = jnp.concatenate(
        [jnp.ones((B, 1), jnp.float32), x @ w + b[None, :]], axis=1
    )
    assert out.shape == (B, p + 1), out.shape
    assert jnp.allclose(out, ref, atol=1e-5, rtol=1e-5), float(
        jnp.max(jnp.abs(out - ref))
    )

    # --- intercept=False path (backbone only) ---
    w_ni, b_ni, p_ni = prepare_llmodel_params(w, b, intercept=False)
    out_ni = jax.block_until_ready(llmodel_process(x, w_ni, b_ni))[:, :p_ni]
    ref_ni = x @ w + b[None, :]
    assert out_ni.shape == (B, p), out_ni.shape
    assert jnp.allclose(out_ni, ref_ni, atol=1e-5, rtol=1e-5)

    # --- ragged batch: partial tail block via pl.cdiv grid, no input padding ---
    B2 = 13
    x2 = x[:B2]
    out2 = jax.block_until_ready(llmodel_process(x2, w_aug, b_aug))[:, :p_out]
    ref2 = jnp.concatenate(
        [jnp.ones((B2, 1), jnp.float32), x2 @ w + b[None, :]], axis=1
    )
    assert out2.shape == (B2, p + 1), out2.shape
    assert jnp.allclose(out2, ref2, atol=1e-5, rtol=1e-5)

    print("KERNEL_OK")
</pallas_src>

<mosaic_0001>
module attributes {stable_mosaic.version = 11 : i64} {
  func.func @_process_kernel(%arg0: i32, %arg1: i32, %arg2: memref<16x24xf32, #tpu.memory_space<vmem>>, %arg3: memref<24x128xf32, #tpu.memory_space<vmem>>, %arg4: memref<1x128xf32, #tpu.memory_space<vmem>>, %arg5: memref<16x128xf32, #tpu.memory_space<vmem>>) attributes {dimension_semantics = [#tpu.dimension_semantics<parallel>, #tpu.dimension_semantics<parallel>], iteration_bounds = array<i64: 1, 1>, scalar_prefetch = 0 : i64, scratch_operands = 0 : i64, tpu.core_type = #tpu.core_type<tc>, window_params = [{transform_indices = @transform_0, window_bounds = array<i64: 16, 24>}, {transform_indices = @transform_1, window_bounds = array<i64: 24, 128>}, {transform_indices = @transform_2, window_bounds = array<i64: 1, 128>}, {transform_indices = @transform_3, window_bounds = array<i64: 16, 128>}]} {
    %c0 = arith.constant 0 : index
    %c0_0 = arith.constant 0 : index
    %0 = vector.load %arg2[%c0, %c0_0] : memref<16x24xf32, #tpu.memory_space<vmem>>, vector<16x24xf32>
    %c0_1 = arith.constant 0 : index
    %c0_2 = arith.constant 0 : index
    %1 = vector.load %arg3[%c0_1, %c0_2] : memref<24x128xf32, #tpu.memory_space<vmem>>, vector<24x128xf32>
    %cst = arith.constant dense<0.000000e+00> : vector<16x128xf32>
    %2 = tpu.matmul %0, %1, %cst {dimension_numbers = #tpu.dot_dimension_numbers<[1], [0], [0], [1], [0, 0, 1, 1], [], []>} : vector<16x24xf32>, vector<24x128xf32>, vector<16x128xf32> -> vector<16x128xf32>
    %c0_3 = arith.constant 0 : index
    %c0_4 = arith.constant 0 : index
    %3 = vector.load %arg4[%c0_3, %c0_4] : memref<1x128xf32, #tpu.memory_space<vmem>>, vector<1x128xf32>
    %4 = vector.broadcast %3 : vector<1x128xf32> to vector<16x128xf32>
    %5 = arith.addf %2, %4 : vector<16x128xf32>
    %c0_5 = arith.constant 0 : index
    %c0_6 = arith.constant 0 : index
    %6 = vector.load %arg5[%c0_5, %c0_6] : memref<16x128xf32, #tpu.memory_space<vmem>>, vector<16x128xf32>
    tpu.vector_store %arg5[%c0_5, %c0_6], %5 {strides = array<i32>} : memref<16x128xf32, #tpu.memory_space<vmem>>, vector<16x128xf32>,
    return
  }
  func.func @transform_0(%arg0: i32, %arg1: i32) -> (i32, i32) {
    %c0_i32 = arith.constant 0 : i32
    %c0_i32_0 = arith.constant 0 : i32
    return %arg0, %c0_i32 : i32, i32
  }
  func.func @transform_1(%arg0: i32, %arg1: i32) -> (i32, i32) {
    %c0_i32 = arith.constant 0 : i32
    %c0_i32_0 = arith.constant 0 : i32
    return %c0_i32, %arg1 : i32, i32
  }
  func.func @transform_2(%arg0: i32, %arg1: i32) -> (i32, i32) {
    %c0_i32 = arith.constant 0 : i32
    %c0_i32_0 = arith.constant 0 : i32
    return %c0_i32, %arg1 : i32, i32
  }
  func.func @transform_3(%arg0: i32, %arg1: i32) -> (i32, i32) {
    %c0_i32 = arith.constant 0 : i32
    return %arg0, %arg1 : i32, i32
  }
}

</mosaic_0001>

<bundles_post_ra>
// kernel: tpu_custom_call.1
= control target key start
LH: loop header
LB: loop body
LE: loop exit
PB: predicated region body
PF: predicated region fallthrough
CT: control target
= control target key end

     0   :  { %8 = vsyncpa [#allocation3], 0  ;;  %s291_s0 = inlined_call_operand.hbm [shape: f32[16,24], index: 0, kind: input, shape index: {}]   ;;  %s292_s1 = inlined_call_operand.hbm [shape: f32[24,128], index: 1, kind: input, shape index: {}]   ;;  %s293_s2 = inlined_call_operand.vmem [shape: f32[1,128], index: 2, kind: input, shape index: {}]   ;;  %s294_s3 = inlined_call_operand.hbm [shape: f32[16,128], index: 3, kind: output, shape index: {}]  }
   0x1   :  { %9 = vsyncpa [#allocation6], 0 }
   0x2   :  { %10 = vsyncpa [#allocation4], 0  ;;  %s245_s12 = smov [#allocation2]  }
   0x3   :  { %s16_s13 = sshll.u32 %s245_s12, 4  ;;  %s17_s13 = int_to_ptr.vmem [resolvable:$true] %s16_s13 }
   0x4   :  { %s187_s14 = scalar_lea.vmem %s17_s13, 256  ;;  %p192_p1 = scmp.lt.s32.totalorder %s17_s13, %s17_s13 }
   0x5   :  { %p188_p0 = scmp.ne.s32.totalorder %s17_s13, %s187_s14  ;;  %p193_p2 = scmp.lt.s32.totalorder %s187_s14, %s187_s14 }
   0x7   :  { %p194_p3 = por %p193_p2, %p192_p1 }
   0x9   :  { %p195_p4 = pnand %p194_p3, %p188_p0 }
   0xb   :  { %198 = shalt.err (!%p195_p4)
}
   0xc   :  { %s246_s15 = smov 128   ;;  %s247_s16 = smov 8  }
   0xd   :  { %22 = dma.hbm_to_vmem [thread:$0]  %s291_s0, 256, %s17_s13, [#allocation3], %s246_s15, %s246_s15, %s247_s16  }
   0xe   :  { %s248_s19 = smov [#allocation5]  }
   0xf   :  { %s28_s20 = sshll.u32 %s248_s19, 4  ;;  %s29_s20 = int_to_ptr.vmem [resolvable:$true] %s28_s20 }
  0x10   :  { %s207_s21 = scalar_lea.vmem %s29_s20, 384  ;;  %p212_p6 = scmp.lt.s32.totalorder %s29_s20, %s29_s20 }
  0x11   :  { %p208_p5 = scmp.ne.s32.totalorder %s29_s20, %s207_s21  ;;  %p213_p7 = scmp.lt.s32.totalorder %s207_s21, %s207_s21 }
  0x13   :  { %p214_p8 = por %p213_p7, %p212_p6 }
  0x15   :  { %p215_p9 = pnand %p214_p8, %p208_p5 }
  0x17   :  { %218 = shalt.err (!%p215_p9)
}
  0x18   :  { %34 = dma.hbm_to_vmem [thread:$0]  %s292_s1, 384, %s29_s20, [#allocation6], %s246_s15, %s246_s15, %s247_s16  }
  0x19   :  { %239 = dma.done.wait [#allocation3], 256  }
  0x1a   :  { %240 = vsyncadd [#allocation3], 4294967040 }
  0x1b   :  { %241 = dma.done.wait [#allocation6], 384  }
  0x1c   :  { %242 = vsyncadd [#allocation6], 4294966912  ;;  %vm55_vm0 = vcmask 195584   ;;  %v47_v0 = vld [vmem:[#allocation5 + $0x10] sm:$0xff]  ;;  %v46_v1 = vld [vmem:[#allocation5 + $0x8] sm:$0xff]  ;;  %s249_s24 = smov [#allocation7]  }
  0x1d   :  { %165 = vmatprep.subr.mxu0 %v47_v0  ;;  %v43_v2 = vld [vmem:[#allocation2] sm:$0xff]  ;;  %v45_v3 = vld [vmem:[#allocation5] sm:$0xff]  ;;  %v44_v4 = vld [vmem:[#allocation2 + $0x8] sm:$0xff]  ;;  %s144_s25 = sshll.u32 %s249_s24, 4  ;;  %s145_s25 = int_to_ptr.vmem [resolvable:$true] %s144_s25 }
  0x1e   :  { %166 = vmatpush3.msra.mxu0 %v47_v0  ;;  %171 = vmatprep.mubr.msk.f32.mxu0 %vm55_vm0, %v43_v2  ;;  %v157_v5 = vld [vmem:[%s293_s2] ss:$0 sm:$0xff]  ;;  %s219_s26 = scalar_lea.vmem %s145_s25, 256  ;;  %p224_p11 = scmp.lt.s32.totalorder %s145_s25, %s145_s25 }
  0x1f   :  { %167 = vmatprep.subr.mxu0 %v46_v1  ;;  %p220_p10 = scmp.ne.s32.totalorder %s145_s25, %s219_s26  ;;  %p225_p12 = scmp.lt.s32.totalorder %s219_s26, %s219_s26 }
  0x20   :  { %168 = vmatpush3.msra.mxu0 %v46_v1 }
  0x21   :  { %169 = vmatprep.subr.mxu0 %v45_v3  ;;  %p226_p13 = por %p225_p12, %p224_p11 }
  0x22   :  { %170 = vmatpush3.msra.mxu0 %v45_v3 }
  0x23   :  { %172 = vmatmul.mubr.msk.f32.vlgmr.msra.gmra.mxu0 %vm55_vm0, %v44_v4  ;;  %p227_p0 = pnand %p226_p13, %p220_p10 }
  0xe3   :  { %v173_v6 = vpop.f32.mrf.mxu0 }
  0xe4   :  { %v134_v7 = vadd.f32 %v173_v6, %v157_v5 }
  0xe5   :  { %v128_v8 = vpop.f32.mrf.mxu0 }
  0xe6   :  { %138 = vst [vmem:[#allocation7 + $0x8] sm:$0xff] %v134_v7  ;;  %v129_v9 = vadd.f32 %v157_v5, %v128_v8 }
  0xe8   :  { %137 = vst [vmem:[#allocation7] sm:$0xff] %v129_v9 }
  0xe9   :  { %230 = shalt.err (!%p227_p0)
}
  0xea   :  { %150 = dma.vmem_to_hbm [thread:$0]  %s145_s25, 256, %s294_s3, [#allocation4], %s246_s15, %s246_s15, %s247_s16  }
  0xeb   :  { %243 = dma.done.wait [#allocation4], 256  }
  0xec   :  { %244 = vsyncadd [#allocation4], 4294967040 }
  0xed   :  { %154 = vsyncpa [#allocation3], 1 }
  0xee   :  { %155 = vsyncpa [#allocation6], 1 }
  0xef   :  { %156 = vsyncpa [#allocation4], 1 }

</bundles_post_ra>
